<compile_context>
chip_gen: v5e
topology: v5e:2x2
jax: 0.10.0
libtpu: 0.0.40
codegen_flags: <defaults>
</compile_context>

<pallas_src>
import jax
import jax.numpy as jnp
from jax import lax
from jax.experimental import pallas as pl
from jax.experimental.pallas import tpu as pltpu


# ---- hyperparameters (CapsLoss defaults, caps_loss_type='margin') ----------
M_PLUS = 0.9
M_MINUS = 0.1
MARGIN_LOSS_LAMBDA = 0.5
RECONSTRUCTION_LOSS_LAMBDA = 0.0005
BATCH_AVERAGED = True


def _round_up(x, m):
    return (x + m - 1) // m * m


def _vmem_capacity_bytes():
    # Generation-aware VMEM capacity (v5e/v6e: 128 MiB, v7x: 64 MiB).
    # Fall back to the smallest known capacity so tiles never overshoot.
    try:
        return int(pltpu.get_tpu_info().vmem_capacity_bytes)
    except Exception:
        return 64 * 1024 * 1024


# ---------------------------------------------------------------------------
# Kernel 1: streaming squared-diff reduction -> per-batch-tile partial sums.
# ---------------------------------------------------------------------------
def _make_recon_kernel(bt, ft):
    n_chunks = ft // 128
    n_sub = bt // 8

    def chunk(recon_ref, orig_ref, off):
        # Slice the refs per 128-lane chunk (no full-tile f32 temporaries).
        r = recon_ref[:, pl.ds(off, 128)].astype(jnp.float32)
        o = orig_ref[:, pl.ds(off, 128)].astype(jnp.float32)
        d = r - o
        sq = d * d                               # (bt, 128), vreg resident
        part = sq[0:8]                           # aligned one-vreg slices
        for s in range(1, n_sub):                # static, small
            part = part + sq[s * 8:(s + 1) * 8]
        return part                              # (8, 128)

    def kernel(recon_ref, orig_ref, out_ref):
        fj = pl.program_id(1)

        @pl.when(fj == 0)
        def _():
            out_ref[...] = jnp.zeros_like(out_ref)

        if n_chunks <= 8:
            # Small tile: short static unroll with static lane offsets.
            part = chunk(recon_ref, orig_ref, 0)
            for j in range(1, n_chunks):
                part = part + chunk(recon_ref, orig_ref, j * 128)
        else:
            # Large tile: bounded-unroll loop keeps vreg pressure / bundle
            # footprint in check.
            def body(j, carry):
                off = pl.multiple_of(j * 128, 128)
                return carry + chunk(recon_ref, orig_ref, off)
            part = lax.fori_loop(0, n_chunks, body,
                                 jnp.zeros((8, 128), jnp.float32),
                                 unroll=4)

        out_ref[...] += part                     # output block = accumulator

    return kernel


# ---------------------------------------------------------------------------
# Kernel 2: tiny finalize -- margin loss + final reduce + weighted combine.
# ---------------------------------------------------------------------------
def _make_finalize_kernel(batch_size):
    scale = (1.0 / batch_size) if BATCH_AVERAGED else 1.0

    def kernel(part_ref, act_ref, tgt_ref, tot_out, marg_out, rec_out):
        rec_loss = jnp.sum(part_ref[...]) * scale

        act = act_ref[...].astype(jnp.float32)
        t_k = tgt_ref[...].astype(jnp.float32)
        correct = t_k * jnp.maximum(0.0, M_PLUS - act) ** 2
        incorrect = ((1.0 - t_k) * MARGIN_LOSS_LAMBDA
                     * jnp.maximum(0.0, act - M_MINUS) ** 2)
        margin_loss = jnp.sum(correct + incorrect) * scale

        tot_out[0, 0] = margin_loss + RECONSTRUCTION_LOSS_LAMBDA * rec_loss
        marg_out[0, 0] = margin_loss
        rec_out[0, 0] = rec_loss

    return kernel


def caps_loss(class_caps_activations, targets, original_inputs,
              reconstructed_inputs, *, batch_tile=None, feature_tile=8192):
    """Returns (total_loss, margin_loss, reconstruction_loss) as scalars."""
    b, num_classes = class_caps_activations.shape
    d = 1
    for s in original_inputs.shape[1:]:
        d *= s

    # Flatten NCHW to [b, C*H*W] (matches torch .view(batch, -1)); keep the
    # native dtype -- the f32 upcast happens on-chip inside the kernel.
    recon_flat = reconstructed_inputs.reshape(b, -1)
    orig_flat = original_inputs.reshape(b, -1)
    act = class_caps_activations.astype(jnp.float32)
    tgt = targets.astype(jnp.float32)

    # ---- tile selection: dtype-aware sublane rounding, lane-dense features --
    itemsize = recon_flat.dtype.itemsize
    sub = {4: 8, 2: 16, 1: 32}.get(itemsize, 8)   # f32 / bf16 / int8 packing

    if batch_tile is None:
        bt = min(_round_up(b, sub), 256)
    else:
        bt = min(_round_up(batch_tile, sub), 256)
    bt = max(bt, sub)

    cap = _vmem_capacity_bytes()
    pipeline_budget = cap // 2                     # 2 streams x 2 buffers
    vmem_limit = min(int(cap * 0.75), cap - 8 * 1024 * 1024)

    d_ceil = _round_up(d, 128)
    ft_req = max(128, _round_up(min(feature_tile, d_ceil), 128))
    max_ft = max(128, (pipeline_budget // (4 * bt * itemsize)) // 128 * 128)
    ft = min(ft_req, max_ft)

    b_pad = _round_up(b, bt)
    d_pad = _round_up(d, ft)
    # Zero-pad both image tensors identically -> padded elements contribute 0.
    if (b_pad, d_pad) != (b, d):
        pad = ((0, b_pad - b), (0, d_pad - d))
        recon_flat = jnp.pad(recon_flat, pad)
        orig_flat = jnp.pad(orig_flat, pad)

    nb = b_pad // bt
    nf = d_pad // ft

    cost = pl.CostEstimate(
        flops=3 * b_pad * d_pad + 8 * b * num_classes,
        transcendentals=0,
        bytes_accessed=2 * b_pad * d_pad * itemsize + nb * 8 * 128 * 4,
    )

    # ---- streaming reduction: per-batch-tile partial sums ------------------
    partials = pl.pallas_call(
        _make_recon_kernel(bt, ft),
        out_shape=jax.ShapeDtypeStruct((nb * 8, 128), jnp.float32),
        grid=(nb, nf),
        in_specs=[
            pl.BlockSpec((bt, ft), lambda i, j: (i, j)),
            pl.BlockSpec((bt, ft), lambda i, j: (i, j)),
        ],
        out_specs=pl.BlockSpec((8, 128), lambda i, j: (i, 0)),
        compiler_params=pltpu.CompilerParams(
            dimension_semantics=("parallel", "arbitrary"),
            vmem_limit_bytes=vmem_limit,
        ),
        cost_estimate=cost,
    )(recon_flat, orig_flat)

    # ---- finalize: margin loss + batch averaging + weighted combine --------
    scalar_shape = jax.ShapeDtypeStruct((1, 1), jnp.float32)
    scalar_spec = pl.BlockSpec((1, 1), lambda i: (0, 0),
                               memory_space=pltpu.SMEM)
    tot, marg, rec = pl.pallas_call(
        _make_finalize_kernel(b),
        out_shape=(scalar_shape, scalar_shape, scalar_shape),
        grid=(1,),
        in_specs=[
            pl.BlockSpec((nb * 8, 128), lambda i: (0, 0)),
            pl.BlockSpec((b, num_classes), lambda i: (0, 0)),
            pl.BlockSpec((b, num_classes), lambda i: (0, 0)),
        ],
        out_specs=(scalar_spec, scalar_spec, scalar_spec),
    )(partials, act, tgt)

    return tot[0, 0], marg[0, 0], rec[0, 0]


def _reference(act, tgt, orig, recon):
    """Pure-JAX reference of the PyTorch forward for verification."""
    act = act.astype(jnp.float32)
    tgt = tgt.astype(jnp.float32)
    zeros = jnp.zeros_like(act)
    correct = tgt * jnp.maximum(zeros, M_PLUS - act) ** 2
    incorrect = (1.0 - tgt) * MARGIN_LOSS_LAMBDA * jnp.maximum(zeros, act - M_MINUS) ** 2
    margin = jnp.mean(jnp.sum(correct + incorrect, axis=-1))
    b = act.shape[0]
    o = orig.reshape(b, -1).astype(jnp.float32)
    r = recon.reshape(b, -1).astype(jnp.float32)
    rec = jnp.mean(jnp.sum((r - o) ** 2, axis=-1))
    return margin + RECONSTRUCTION_LOSS_LAMBDA * rec, margin, rec


if __name__ == "__main__":
    key = jax.random.PRNGKey(0)
    k1, k2, k3, k4, k5, k6 = jax.random.split(key, 6)

    # ---- test 1: f32 images, multi-step feature grid (static-unroll path) --
    b, num_classes = 2, 10
    c, h, w = 4, 16, 16
    class_caps_activations = jax.random.uniform(k1, (b, num_classes), dtype=jnp.float32)
    labels = jax.random.randint(k2, (b,), 0, num_classes)
    targets = jax.nn.one_hot(labels, num_classes, dtype=jnp.float32)
    original_inputs = jax.random.uniform(k3, (b, c, h, w), dtype=jnp.float32)
    reconstructed_inputs = jax.random.uniform(k4, (b, c, h, w), dtype=jnp.float32)

    # feature_tile=256 forces a (1, 4) grid so the init/accumulate path runs.
    tot, marg, rec = caps_loss(class_caps_activations, targets,
                               original_inputs, reconstructed_inputs,
                               feature_tile=256)
    jax.block_until_ready((tot, marg, rec))
    tot_r, marg_r, rec_r = _reference(class_caps_activations, targets,
                                      original_inputs, reconstructed_inputs)
    assert jnp.allclose(tot, tot_r, rtol=1e-5, atol=1e-5), (tot, tot_r)
    assert jnp.allclose(marg, marg_r, rtol=1e-5, atol=1e-5), (marg, marg_r)
    assert jnp.allclose(rec, rec_r, rtol=1e-5, atol=1e-5), (rec, rec_r)

    # ---- test 2: bf16 images, large tile (fori_loop chunk path, on-chip cast)
    c2, h2, w2 = 8, 32, 64                     # d = 16384 -> 64 lane chunks
    orig2 = jax.random.uniform(k5, (b, c2, h2, w2), dtype=jnp.float32).astype(jnp.bfloat16)
    recon2 = jax.random.uniform(k6, (b, c2, h2, w2), dtype=jnp.float32).astype(jnp.bfloat16)

    tot2, marg2, rec2 = caps_loss(class_caps_activations, targets, orig2, recon2)
    jax.block_until_ready((tot2, marg2, rec2))
    tot2_r, marg2_r, rec2_r = _reference(class_caps_activations, targets, orig2, recon2)
    assert jnp.allclose(tot2, tot2_r, rtol=1e-4, atol=1e-4), (tot2, tot2_r)
    assert jnp.allclose(marg2, marg2_r, rtol=1e-4, atol=1e-4), (marg2, marg2_r)
    assert jnp.allclose(rec2, rec2_r, rtol=1e-4, atol=1e-4), (rec2, rec2_r)

    print("KERNEL_OK")
</pallas_src>

<mosaic_0001>
module attributes {stable_mosaic.version = 11 : i64} {
  func.func @kernel(%arg0: i32, %arg1: i32, %arg2: memref<8x256xf32, #tpu.memory_space<vmem>>, %arg3: memref<8x256xf32, #tpu.memory_space<vmem>>, %arg4: memref<8x128xf32, #tpu.memory_space<vmem>>) attributes {dimension_semantics = [#tpu.dimension_semantics<parallel>, #tpu.dimension_semantics<arbitrary>], iteration_bounds = array<i64: 1, 4>, scalar_prefetch = 0 : i64, scratch_operands = 0 : i64, tpu.core_type = #tpu.core_type<tc>, window_params = [{transform_indices = @transform_0, window_bounds = array<i64: 8, 256>}, {transform_indices = @transform_1, window_bounds = array<i64: 8, 256>}, {transform_indices = @transform_2, window_bounds = array<i64: 8, 128>}]} {
    %c0_i32 = arith.constant 0 : i32
    %0 = arith.cmpi eq, %arg1, %c0_i32 : i32
    %1 = arith.extui %0 : i1 to i32
    %c0_i32_0 = arith.constant 0 : i32
    %2 = arith.cmpi ne, %1, %c0_i32_0 : i32
    scf.if %2 {
      %cst = arith.constant 0.000000e+00 : f32
      %15 = vector.broadcast %cst : f32 to vector<8x128xf32>
      %c0_11 = arith.constant 0 : index
      %c0_12 = arith.constant 0 : index
      %16 = vector.load %arg4[%c0_11, %c0_12] : memref<8x128xf32, #tpu.memory_space<vmem>>, vector<8x128xf32>
      tpu.vector_store %arg4[%c0_11, %c0_12], %15 {strides = array<i32>} : memref<8x128xf32, #tpu.memory_space<vmem>>, vector<8x128xf32>,
    } else {
    }
    %c0 = arith.constant 0 : index
    %c0_1 = arith.constant 0 : index
    %3 = vector.load %arg2[%c0, %c0_1] : memref<8x256xf32, #tpu.memory_space<vmem>>, vector<8x128xf32>
    %c0_2 = arith.constant 0 : index
    %c0_3 = arith.constant 0 : index
    %4 = vector.load %arg3[%c0_2, %c0_3] : memref<8x256xf32, #tpu.memory_space<vmem>>, vector<8x128xf32>
    %5 = arith.subf %3, %4 : vector<8x128xf32>
    %6 = arith.mulf %5, %5 : vector<8x128xf32>
    %c0_4 = arith.constant 0 : index
    %c128 = arith.constant 128 : index
    %7 = vector.load %arg2[%c0_4, %c128] : memref<8x256xf32, #tpu.memory_space<vmem>>, vector<8x128xf32>
    %c0_5 = arith.constant 0 : index
    %c128_6 = arith.constant 128 : index
    %8 = vector.load %arg3[%c0_5, %c128_6] : memref<8x256xf32, #tpu.memory_space<vmem>>, vector<8x128xf32>
    %9 = arith.subf %7, %8 : vector<8x128xf32>
    %10 = arith.mulf %9, %9 : vector<8x128xf32>
    %11 = arith.addf %6, %10 : vector<8x128xf32>
    %c0_7 = arith.constant 0 : index
    %c0_8 = arith.constant 0 : index
    %12 = vector.load %arg4[%c0_7, %c0_8] : memref<8x128xf32, #tpu.memory_space<vmem>>, vector<8x128xf32>
    %13 = arith.addf %12, %11 : vector<8x128xf32>
    %c0_9 = arith.constant 0 : index
    %c0_10 = arith.constant 0 : index
    %14 = vector.load %arg4[%c0_9, %c0_10] : memref<8x128xf32, #tpu.memory_space<vmem>>, vector<8x128xf32>
    tpu.vector_store %arg4[%c0_9, %c0_10], %13 {strides = array<i32>} : memref<8x128xf32, #tpu.memory_space<vmem>>, vector<8x128xf32>,
    return
  }
  func.func @transform_0(%arg0: i32, %arg1: i32) -> (i32, i32) {
    %c0_i32 = arith.constant 0 : i32
    return %arg0, %arg1 : i32, i32
  }
  func.func @transform_1(%arg0: i32, %arg1: i32) -> (i32, i32) {
    %c0_i32 = arith.constant 0 : i32
    return %arg0, %arg1 : i32, i32
  }
  func.func @transform_2(%arg0: i32, %arg1: i32) -> (i32, i32) {
    %c0_i32 = arith.constant 0 : i32
    %c0_i32_0 = arith.constant 0 : i32
    return %arg0, %c0_i32 : i32, i32
  }
}

</mosaic_0001>

<bundles_post_ra>
// kernel: tpu_custom_call.1
= control target key start
LH: loop header
LB: loop body
LE: loop exit
PB: predicated region body
PF: predicated region fallthrough
CT: control target
= control target key end

     0   :  { %7 = vsyncpa [#allocation3], 0  ;;  %s685_s0 = inlined_call_operand.hbm [shape: f32[8,1024], index: 0, kind: input, shape index: {}]   ;;  %s686_s1 = inlined_call_operand.hbm [shape: f32[8,1024], index: 1, kind: input, shape index: {}]   ;;  %s687_s2 = inlined_call_operand.hbm [shape: f32[8,128], index: 2, kind: output, shape index: {}]  }
   0x1   :  { %9 = vsyncpa [#allocation3 + $0x1], 0 }
   0x2   :  { %10 = vsyncpa [#allocation6], 0 }
   0x3   :  { %12 = vsyncpa [#allocation6 + $0x1], 0 }
   0x4   :  { %13 = vsyncpa [#allocation4], 0  ;;  %s587_s9 = smov 0   ;;  %s589_s10 = smov 0  }
   0x5   :  { %s591_s11 = smov 0   ;;  %s593_s12 = smov 0  }
   0x6   :  { %s595_s13 = smov 0   ;;  %s597_s14 = smov 0  }
   0x7 LB: > { %s335_s15 = sadd.s32 4294967295, %s568_s14   ;;  %s28_s16 = sadd.s32 1, %s564_s13  ;;  %s568_s14 = sphi %s597_s14, %s19_s14   ;;  %s564_s13 = sphi %s595_s13, %s694_s13   ;;  %s560_s12 = sphi %s593_s12, %s693_s12   ;;  %s556_s11 = sphi %s591_s11, %s692_s11   ;;  %s552_s10 = sphi %s589_s10, %s691_s10   ;;  %s548_s9 = sphi %s587_s9, %s690_s9  }
   0x8   : > { %p29_p0 = scmp.ge.s32.totalorder %s28_s16, 4  ;;  %s40_s17 = sadd.s32 1, %s556_s11 }
   0x9   : > { %p47_p1 = scmp.ne.s32.totalorder %s556_s11, %s552_s10  ;;  %p48_p2 = scmp.eq.s32.totalorder %s568_s14, 0 }
   0xa   : > { %s696_s16 = smov (%p29_p0, %s28_s16), 0  ;;  %p53_p4 = scmp.ne.s32.totalorder %s552_s10, %s548_s9 }
   0xb   : > { %p623_p3 = por %p48_p2, %p47_p1  ;;  %s36_s19 = ssub.s32 %s564_s13, %s696_s16 }
   0xc   : > { %p54_p5 = scmp.eq.s32.totalorder %s335_s15, 0  ;;  %p38_p6 = scmp.eq.s32.totalorder %s36_s19, 0 }
   0xd   : > { %p369_p8 = scmp.lt.s32.totalorder %s568_s14, 4  ;;  %s131_s22 = sand.u32 1, %s556_s11  }
   0xe   : > { %p632_p7 = por %p54_p5, %p53_p4  ;;  %s352_s23 = sshll.u32 %s564_s13, 4 }
   0xf   : > { %s638_s21 = scalar_select %p38_p6, %s556_s11, %s40_s17  }
  0x10   : > { %s338_s24 = sshll.u32 %s131_s22, 4  ;;  %s142_s27 = scalar_lea.hbm %s685_s0, %s352_s23 }
  0x11   : > { %s144_s28 = sshll.u32 %s142_s27, 4  ;;  %s135_s29 = scalar_lea.vmem [#allocation2], %s338_s24  ;;  %s145_s28 = int_to_ptr.hbm [resolvable:$true] %s144_s28 }
  0x12   : > { %s146_s30 = sshll.u32 %s135_s29, 4  ;;  %p363_p9 = pnand %p369_p8, %p623_p3  ;;  %s147_s30 = int_to_ptr.vmem [resolvable:$true] %s146_s30 }
  0x13   : > { %p344_p10 = scmp.ge.s32.totalorder %s568_s14, 1  ;;  %p173_p11 = scmp.lt.s32.totalorder %s568_s14, 5 }
  0x14   : > { %s132_s3 = scalar_lea.sflag [#allocation3], %s131_s22  ;;  %s164_s6 = scalar_lea.hbm %s686_s1, %s352_s23 }
  0x15   : > { %365 = dma.hbm_to_vmem [thread:$0]  (!%p363_p9), %s145_s28, 256, %s147_s30, %s132_s3  }
  0x16   : > { %p174_p12 = pnand %p344_p10, %p173_p11  ;;  %s166_s7 = sshll.u32 %s164_s6, 4  ;;  %s167_s7 = int_to_ptr.hbm [resolvable:$true] %s166_s7 }
  0x17   : > { %s157_s8 = scalar_lea.vmem [#allocation5], %s338_s24  ;;  %s154_s17 = scalar_lea.sflag [#allocation6], %s131_s22 }
  0x18   : > { %s168_s9 = sshll.u32 %s157_s8, 4  ;;  %177 = sbr.rel (%p174_p12) target bundleno = 55 (0x37), region = 28  ;;  %s169_s9 = int_to_ptr.vmem [resolvable:$true] %s168_s9 }
  0x19   : > { %368 = dma.hbm_to_vmem [thread:$0]  (!%p363_p9), %s167_s7, 256, %s169_s9, %s154_s17  }
  0x1a   : > { %s179_s18 = sand.u32 (!%p174_p12), 1, %s552_s10  }
  0x1b   : > { %s345_s19 = sshll.u32 (!%p174_p12), %s179_s18, 4  ;;  %s180_s25 = scalar_lea.sflag (!%p174_p12), [#allocation3], %s179_s18 }
  0x1c   : > { %s183_s26 = scalar_lea.vmem (!%p174_p12), [#allocation2], %s345_s19 }
  0x1d   : > { %535 = dma.done.wait (%p632_p7), %s180_s25, 256  }
  0x1e   : > { %537 = vsyncadd (%p632_p7), %s180_s25, 4294967040  ;;  %s190_s23 = scalar_lea.sflag [#allocation6], %s179_s18  ;;  %s193_s24 = scalar_lea.vmem [#allocation5], %s345_s19 }
  0x1f   : > { %539 = dma.done.wait (%p632_p7), %s190_s23, 256  }
  0x20   : > { %541 = vsyncadd (%p632_p7), %s190_s23, 4294967040  ;;  %p347_p13 = scmp.ne.s32.totalorder %s560_s12, 0 }
  0x22   : > { %220 = sbr.rel (%p347_p13) target bundleno = 41 (0x29), region = 40 }
  0x27   : > { %v570_v0 = vmov 0.0  }
  0x28   : > { %221 = vst [vmem:[#allocation7] sm:$0xff] %v570_v0 }
  0x29 PF: > { %v222_v1 = vld [vmem:[%s183_s26] sm:$0xff]  ;;  %v226_v3 = vld [vmem:[%s183_s26 + $0x8] sm:$0xff]  ;;  %s571_s22 = smov [#allocation7]   ;;  %s244_s12 = sshll.u32 %s687_s2, 4  ;;  %s245_s12 = int_to_ptr.hbm [resolvable:$true] %s244_s12 }
  0x2a   : > { %v223_v2 = vld [vmem:[%s193_s24] sm:$0xff]  ;;  %v227_v5 = vld [vmem:[%s193_s24 + $0x8] sm:$0xff]  ;;  %s242_s27 = sshll.u32 %s571_s22, 4  ;;  %p370_p0 = scmp.eq.s32.totalorder %s335_s15, 3  ;;  %s243_s27 = int_to_ptr.vmem [resolvable:$true] %s242_s27 }
  0x2b   : > { %v224_v4 = vsub.f32 %v222_v1, %v223_v2  ;;  %v228_v6 = vsub.f32 %v226_v3, %v227_v5 }
  0x2d   : > { %v225_v7 = vmul.f32 %v224_v4, %v224_v4  ;;  %v229_v8 = vmul.f32 %v228_v6, %v228_v6 }
  0x2f   : > { %v231_v9 = vld [vmem:[#allocation7] sm:$0xff]  ;;  %v230_v10 = vadd.f32 %v229_v8, %v225_v7 }
  0x31   : > { %v232_v11 = vadd.f32 %v231_v9, %v230_v10 }
  0x33   : > { %233 = vst [vmem:[#allocation7] sm:$0xff] %v232_v11 }
  0x34   : > { %359 = dma.vmem_to_hbm [thread:$0]  (%p370_p0), %s243_s27, 128, %s245_s12, [#allocation4]  }
  0x35   : > { %543 = dma.done.wait (%p370_p0), [#allocation4], 128  }
  0x36   : > { %545 = vsyncadd (%p370_p0), [#allocation4], 4294967168 }
  0x37 PF: > { %s19_s14 = sadd.s32 1, %s568_s14   ;;  %s690_s9 = smov %s552_s10 }
  0x38   : > { %p16_p1 = scmp.ge.s32.totalorder %s19_s14, 6   ;;  %s691_s10 = smov %s556_s11 }
  0x39   : > { %s692_s11 = smov %s638_s21  ;;  %s693_s12 = smov %s564_s13 }
  0x3a   : > { %s694_s13 = smov %s696_s16  ;;  %18 = sbr.rel (!%p16_p1) target bundleno = 7 (0x7), region = 83 }
  0x3f   :  { %258 = vsyncpa [#allocation3], 1 }
  0x40   :  { %260 = vsyncpa [#allocation3 + $0x1], 1 }
  0x41   :  { %261 = vsyncpa [#allocation6], 1 }
  0x42   :  { %263 = vsyncpa [#allocation6 + $0x1], 1 }
  0x43   :  { %264 = vsyncpa [#allocation4], 1 }
  0x44   :  { %266 = vsyncpa [#allocation4 + $0x1], 1 }

</bundles_post_ra>
